<compile_context>
chip_gen: v7x
topology: tpu7x:2x2x1
jax: 0.10.0
libtpu: 0.0.40
codegen_flags: <defaults>
</compile_context>

<pallas_src>
import jax
import jax.numpy as jnp
from jax.experimental import pallas as pl
from jax.experimental.pallas import tpu as pltpu

_HI = jax.lax.Precision.HIGHEST


def _channel_mix_kernel(x_ref, w1_ref, b1_ref, w2_ref, o_ref):
    # x_ref : (B_blk, C, P)  frequency-domain activations; pixels on lanes
    # w1_ref: (C, C)         1x1 conv weight (Cout, Cin)
    # b1_ref: (C, 1)         1x1 conv bias
    # w2_ref: (C, C)         df1 channel-mix weight
    # o_ref : (B_blk, C, P)
    w1 = w1_ref[...]
    b1 = b1_ref[...]
    w2 = w2_ref[...]
    # Static unroll over the images in this block: independent matmul chains
    # that the LLO scheduler interleaves on the MXU (hides fill/drain latency).
    for b in range(x_ref.shape[0]):
        x = x_ref[b]                                                # (C, P)
        y = jnp.dot(w1, x, preferred_element_type=jnp.float32, precision=_HI)
        y = jnp.maximum(y + b1, 0.0)                                # bias+ReLU
        z = jnp.dot(w2, y, preferred_element_type=jnp.float32, precision=_HI)
        o_ref[b] = z.astype(o_ref.dtype)


def _num_grid_blocks(N):
    """2 parallel steps on dual-TensorCore chips (v7x) when the batch splits
    evenly; otherwise 1 step to amortise the per-grid-step overhead."""
    try:
        kind = jax.devices()[0].device_kind.lower()
    except Exception:
        kind = ""
    if ("v7" in kind) and N >= 2 and N % 2 == 0:
        return 2
    return 1


def channel_mix_pallas(x, conv_w, conv_b, df1_w):
    """x: (N, C, H, Wf) real; conv_w/df1_w: (C, C); conv_b: (C,)."""
    N, C, H, Wf = x.shape
    P = H * Wf
    x2 = x.reshape(N, C, P)          # contiguous reshape, no data movement
    b2 = conv_b.reshape(C, 1)

    G = _num_grid_blocks(N)
    B_blk = N // G

    cost = pl.CostEstimate(
        flops=2 * (2 * C * C * P) * N,               # two CxCxP matmuls/image
        transcendentals=0,
        bytes_accessed=(2 * N * C * P + 2 * C * C + C) * 4,
    )

    out = pl.pallas_call(
        _channel_mix_kernel,
        out_shape=jax.ShapeDtypeStruct((N, C, P), x.dtype),
        grid_spec=pltpu.PrefetchScalarGridSpec(
            num_scalar_prefetch=0,
            grid=(G,),
            in_specs=[
                pl.BlockSpec((B_blk, C, P), lambda n: (n, 0, 0)),
                pl.BlockSpec((C, C), lambda n: (0, 0)),
                pl.BlockSpec((C, 1), lambda n: (0, 0)),
                pl.BlockSpec((C, C), lambda n: (0, 0)),
            ],
            out_specs=pl.BlockSpec((B_blk, C, P), lambda n: (n, 0, 0)),
        ),
        compiler_params=pltpu.CompilerParams(
            dimension_semantics=("parallel",)),
        cost_estimate=cost,
    )(x2, conv_w, b2, df1_w)
    return out.reshape(N, C, H, Wf)


def shu_forward(x, conv_w, conv_b, df1_w):
    """shu.forward with the channel mixing done in Pallas.

    x: (N, c, H, W) real; conv_w/df1_w: (2c, 2c); conv_b: (2c,).
    """
    N, c, H, W = x.shape
    ffted = jnp.fft.rfftn(x + 1e-8, axes=(-2, -1))           # (N, c, H, W//2+1)

    # Forward shift is roll(-(H//2+1)); inverse shift is roll(-(H//2-1)).
    # The Pallas mix is per-pixel (frequency-independent), so when the two
    # rolls cancel ((H//2+1)+(H//2-1) == H) both shifts are the identity and
    # are elided -> two full HBM passes over the spectrum removed.
    shifts_cancel = ((H // 2 + 1) + (H // 2 - 1)) == H
    if not shifts_cancel:
        ffted = jnp.roll(ffted, -(H // 2 + 1), axis=2)

    fr = jnp.concatenate([ffted.real, ffted.imag], axis=1)   # (N, 2c, H, Wf)

    # 1x1 conv + bias + ReLU + df1 channel mix (single Pallas kernel).
    # TODO(synk): heterogeneous_filter(freedom=[3,2], type='piecewise_linear')
    # is not defined in the spec; it is modelled as a frequency-independent
    # (2c x 2c) channel mix using df1.weight.
    mixed = channel_mix_pallas(fr, conv_w, conv_b, df1_w)    # (N, 2c, H, Wf)

    fc = jax.lax.complex(mixed[:, :c], mixed[:, c:])         # (N, c, H, Wf)
    if not shifts_cancel:
        fc = jnp.roll(fc, -(H // 2 - 1), axis=2)
    return jnp.fft.irfftn(fc + 1e-8, axes=(-2, -1))          # (N, c, H, W)


def shu_reference(x, conv_w, conv_b, df1_w):
    """Pure-JAX reference (no Pallas, shifts kept exactly as in the module)."""
    N, c, H, W = x.shape
    ffted = jnp.fft.rfftn(x + 1e-8, axes=(-2, -1))
    s = ffted.shape[2] // 2 + 1
    ffted = jnp.concatenate([ffted[:, :, s:, :], ffted[:, :, :s, :]], axis=2)
    fr = jnp.concatenate([ffted.real, ffted.imag], axis=1)
    y = jnp.einsum('oc,nchw->nohw', conv_w, fr, precision=_HI)
    y = jnp.maximum(y + conv_b[None, :, None, None], 0.0)
    y = jnp.einsum('oc,nchw->nohw', df1_w, y, precision=_HI)
    fc = jax.lax.complex(y[:, :c], y[:, c:])
    s2 = fc.shape[2] // 2 - 1
    fc = jnp.concatenate([fc[:, :, s2:, :], fc[:, :, :s2, :]], axis=2)
    return jnp.fft.irfftn(fc + 1e-8, axes=(-2, -1))


if __name__ == "__main__":
    # shu(dim=4): conv = Conv2d(8, 8, 1), df1 mixes 8 -> 8 channels.
    N, dim, H, W = 2, 4, 16, 16
    C = 2 * dim

    key = jax.random.PRNGKey(0)
    kx, kw, kb, kd = jax.random.split(key, 4)
    x = jax.random.normal(kx, (N, dim, H, W), dtype=jnp.float32)

    # Conv2d(2c, 2c, 1) parameters (1x1 kernel squeezed to (Cout, Cin)).
    bound = 1.0 / (C ** 0.5)
    conv_w = jax.random.uniform(kw, (C, C), minval=-bound, maxval=bound,
                                dtype=jnp.float32)
    conv_b = jax.random.uniform(kb, (C,), minval=-bound, maxval=bound,
                                dtype=jnp.float32)
    # df1.weight ~ Normal(mean=1/(2*dim), std=0.1/(2*dim)) as in the module.
    df1_w = (1.0 / C) + (0.1 / C) * jax.random.normal(kd, (C, C),
                                                      dtype=jnp.float32)

    fwd = jax.jit(shu_forward)
    out = jax.block_until_ready(fwd(x, conv_w, conv_b, df1_w))

    ref = shu_reference(x, conv_w, conv_b, df1_w)
    assert out.shape == (N, dim, H, W), out.shape
    assert jnp.allclose(out, ref, atol=2e-4, rtol=2e-4), \
        float(jnp.max(jnp.abs(out - ref)))

    print("KERNEL_OK")
</pallas_src>

<mosaic_0001>
module attributes {stable_mosaic.version = 11 : i64} {
  func.func @_channel_mix_kernel(%arg0: i32, %arg1: memref<2x8x144xf32, #tpu.memory_space<vmem>>, %arg2: memref<8x8xf32, #tpu.memory_space<vmem>>, %arg3: memref<8x1xf32, #tpu.memory_space<vmem>>, %arg4: memref<8x8xf32, #tpu.memory_space<vmem>>, %arg5: memref<2x8x144xf32, #tpu.memory_space<vmem>>) attributes {dimension_semantics = [#tpu.dimension_semantics<parallel>], iteration_bounds = array<i64: 1>, scalar_prefetch = 0 : i64, scratch_operands = 0 : i64, tpu.core_type = #tpu.core_type<tc>, window_params = [{transform_indices = @transform_0, window_bounds = array<i64: 2, 8, 144>}, {pipeline_mode = #tpu.pipeline_mode<synchronous>, transform_indices = @transform_1, window_bounds = array<i64: 8, 8>}, {pipeline_mode = #tpu.pipeline_mode<synchronous>, transform_indices = @transform_2, window_bounds = array<i64: 8, 1>}, {pipeline_mode = #tpu.pipeline_mode<synchronous>, transform_indices = @transform_3, window_bounds = array<i64: 8, 8>}, {transform_indices = @transform_4, window_bounds = array<i64: 2, 8, 144>}]} {
    %c0 = arith.constant 0 : index
    %c0_0 = arith.constant 0 : index
    %0 = vector.load %arg2[%c0, %c0_0] : memref<8x8xf32, #tpu.memory_space<vmem>>, vector<8x8xf32>
    %c0_1 = arith.constant 0 : index
    %c0_2 = arith.constant 0 : index
    %1 = vector.load %arg3[%c0_1, %c0_2] : memref<8x1xf32, #tpu.memory_space<vmem>>, vector<8x1xf32>
    %c0_3 = arith.constant 0 : index
    %c0_4 = arith.constant 0 : index
    %2 = vector.load %arg4[%c0_3, %c0_4] : memref<8x8xf32, #tpu.memory_space<vmem>>, vector<8x8xf32>
    %c0_5 = arith.constant 0 : index
    %c0_6 = arith.constant 0 : index
    %c0_7 = arith.constant 0 : index
    %3 = vector.load %arg1[%c0_5, %c0_6, %c0_7] : memref<2x8x144xf32, #tpu.memory_space<vmem>>, vector<1x8x144xf32>
    %4 = vector.shape_cast %3 : vector<1x8x144xf32> to vector<8x144xf32>
    %cst = arith.constant dense<0.000000e+00> : vector<8x144xf32>
    %5 = tpu.matmul %0, %4, %cst {dimension_numbers = #tpu.dot_dimension_numbers<[1], [0], [0], [1], [0, 0, 1, 1], [], []>, precision = #tpu.contract_precision<fp32>} : vector<8x8xf32>, vector<8x144xf32>, vector<8x144xf32> -> vector<8x144xf32>
    %6 = vector.broadcast %1 : vector<8x1xf32> to vector<8x144xf32>
    %7 = arith.addf %5, %6 : vector<8x144xf32>
    %cst_8 = arith.constant 0.000000e+00 : f32
    %8 = vector.broadcast %cst_8 : f32 to vector<8x144xf32>
    %9 = arith.maximumf %7, %8 : vector<8x144xf32>
    %cst_9 = arith.constant dense<0.000000e+00> : vector<8x144xf32>
    %10 = tpu.matmul %2, %9, %cst_9 {dimension_numbers = #tpu.dot_dimension_numbers<[1], [0], [0], [1], [0, 0, 1, 1], [], []>, precision = #tpu.contract_precision<fp32>} : vector<8x8xf32>, vector<8x144xf32>, vector<8x144xf32> -> vector<8x144xf32>
    %c0_10 = arith.constant 0 : index
    %c0_11 = arith.constant 0 : index
    %c0_12 = arith.constant 0 : index
    %11 = vector.load %arg5[%c0_10, %c0_11, %c0_12] : memref<2x8x144xf32, #tpu.memory_space<vmem>>, vector<1x8x144xf32>
    %12 = vector.shape_cast %11 : vector<1x8x144xf32> to vector<8x144xf32>
    %13 = vector.shape_cast %10 : vector<8x144xf32> to vector<1x8x144xf32>
    tpu.vector_store %arg5[%c0_10, %c0_11, %c0_12], %13 {strides = array<i32>} : memref<2x8x144xf32, #tpu.memory_space<vmem>>, vector<1x8x144xf32>,
    %c1 = arith.constant 1 : index
    %c0_13 = arith.constant 0 : index
    %c0_14 = arith.constant 0 : index
    %14 = vector.load %arg1[%c1, %c0_13, %c0_14] : memref<2x8x144xf32, #tpu.memory_space<vmem>>, vector<1x8x144xf32>
    %15 = vector.shape_cast %14 : vector<1x8x144xf32> to vector<8x144xf32>
    %cst_15 = arith.constant dense<0.000000e+00> : vector<8x144xf32>
    %16 = tpu.matmul %0, %15, %cst_15 {dimension_numbers = #tpu.dot_dimension_numbers<[1], [0], [0], [1], [0, 0, 1, 1], [], []>, precision = #tpu.contract_precision<fp32>} : vector<8x8xf32>, vector<8x144xf32>, vector<8x144xf32> -> vector<8x144xf32>
    %17 = vector.broadcast %1 : vector<8x1xf32> to vector<8x144xf32>
    %18 = arith.addf %16, %17 : vector<8x144xf32>
    %cst_16 = arith.constant 0.000000e+00 : f32
    %19 = vector.broadcast %cst_16 : f32 to vector<8x144xf32>
    %20 = arith.maximumf %18, %19 : vector<8x144xf32>
    %cst_17 = arith.constant dense<0.000000e+00> : vector<8x144xf32>
    %21 = tpu.matmul %2, %20, %cst_17 {dimension_numbers = #tpu.dot_dimension_numbers<[1], [0], [0], [1], [0, 0, 1, 1], [], []>, precision = #tpu.contract_precision<fp32>} : vector<8x8xf32>, vector<8x144xf32>, vector<8x144xf32> -> vector<8x144xf32>
    %c1_18 = arith.constant 1 : index
    %c0_19 = arith.constant 0 : index
    %c0_20 = arith.constant 0 : index
    %22 = vector.load %arg5[%c1_18, %c0_19, %c0_20] : memref<2x8x144xf32, #tpu.memory_space<vmem>>, vector<1x8x144xf32>
    %23 = vector.shape_cast %22 : vector<1x8x144xf32> to vector<8x144xf32>
    %24 = vector.shape_cast %21 : vector<8x144xf32> to vector<1x8x144xf32>
    tpu.vector_store %arg5[%c1_18, %c0_19, %c0_20], %24 {strides = array<i32>} : memref<2x8x144xf32, #tpu.memory_space<vmem>>, vector<1x8x144xf32>,
    return
  }
  func.func @transform_0(%arg0: i32) -> (i32, i32, i32) {
    %c0_i32 = arith.constant 0 : i32
    %c0_i32_0 = arith.constant 0 : i32
    %c0_i32_1 = arith.constant 0 : i32
    return %arg0, %c0_i32, %c0_i32_0 : i32, i32, i32
  }
  func.func @transform_1(%arg0: i32) -> (i32, i32) {
    %c0_i32 = arith.constant 0 : i32
    %c0_i32_0 = arith.constant 0 : i32
    %c0_i32_1 = arith.constant 0 : i32
    return %c0_i32, %c0_i32_0 : i32, i32
  }
  func.func @transform_2(%arg0: i32) -> (i32, i32) {
    %c0_i32 = arith.constant 0 : i32
    %c0_i32_0 = arith.constant 0 : i32
    %c0_i32_1 = arith.constant 0 : i32
    return %c0_i32, %c0_i32_0 : i32, i32
  }
  func.func @transform_3(%arg0: i32) -> (i32, i32) {
    %c0_i32 = arith.constant 0 : i32
    %c0_i32_0 = arith.constant 0 : i32
    %c0_i32_1 = arith.constant 0 : i32
    return %c0_i32, %c0_i32_0 : i32, i32
  }
  func.func @transform_4(%arg0: i32) -> (i32, i32, i32) {
    %c0_i32 = arith.constant 0 : i32
    %c0_i32_0 = arith.constant 0 : i32
    %c0_i32_1 = arith.constant 0 : i32
    return %arg0, %c0_i32, %c0_i32_0 : i32, i32, i32
  }
}

</mosaic_0001>

<bundles_post_ra>
// kernel: reverse.0
= control target key start
LH: loop header
LB: loop body
LE: loop exit
PB: predicated region body
PF: predicated region fallthrough
CT: control target
= control target key end

     0   :  { %v71_v3 = vlaneseq  ;;  %v64_v9 = vld [vmem:[#allocation0 + $0x7] ss:$-1 sm:$0xff]  ;;  %v78_v12 = vld [vmem:[#allocation0 + $0x17] ss:$-1 sm:$0xff]  ;;  %s329_s0 = inlined_call_operand.vmem [shape: f32[2,4,16,7], index: 0, kind: input, shape index: {}]   ;;  %s330_s1 = inlined_call_operand.vmem [shape: f32[2,4,16,7], index: 1, kind: output, shape index: {}]  }
   0x1   :  { %v44_v0 = vld [vmem:[%s329_s0] sm:$0xff]  ;;  %v46_v1 = vld [vmem:[%s329_s0 + $0x8] sm:$0xff]  ;;  %v48_v2 = vld [vmem:[%s329_s0 + $0x10] sm:$0xff]  ;;  %v65_v10 = vrot.slane %v64_v9, 1  ;;  %v79_v14 = vrot.slane %v78_v12, 1 }
   0x2   :  { %45 = vst [vmem:[#allocation0 + $0x8] sm:$0xff] %v44_v0  ;;  %47 = vst [vmem:[#allocation0 + $0x18] sm:$0xff] %v46_v1  ;;  %v50_v4 = vld [vmem:[%s329_s0 + $0x18] sm:$0xff]  ;;  %v52_v5 = vld [vmem:[%s329_s0 + $0x20] sm:$0xff]  ;;  %v72_v11 = vshrl.u32 %v71_v3, 7 }
   0x3   :  { %49 = vst [vmem:[#allocation0 + $0x28] sm:$0xff] %v48_v2  ;;  %v54_v6 = vld [vmem:[%s329_s0 + $0x28] sm:$0xff]  ;;  %51 = vst [vmem:[#allocation0 + $0x38] sm:$0xff] %v50_v4  ;;  %v56_v7 = vld [vmem:[%s329_s0 + $0x30] sm:$0xff] }
   0x4   :  { %53 = vst [vmem:[#allocation0 + $0x48] sm:$0xff] %v52_v5  ;;  %55 = vst [vmem:[#allocation0 + $0x58] sm:$0xff] %v54_v6  ;;  %v58_v8 = vld [vmem:[%s329_s0 + $0x38] sm:$0xff]  ;;  %v92_v13 = vld [vmem:[#allocation0 + $0x27] ss:$-1 sm:$0xff]  ;;  %vm73_vm0 = vcmp.lt.s32.totalorder %v72_v11, 7 }
   0x5   :  { %57 = vst [vmem:[#allocation0 + $0x68] sm:$0xff] %v56_v7  ;;  %59 = vst [vmem:[#allocation0 + $0x78] sm:$0xff] %v58_v8  ;;  %v93_v15 = vrot.slane %v92_v13, 1  ;;  %v106_v16 = vld [vmem:[#allocation0 + $0x37] ss:$-1 sm:$0xff] }
   0x6   :  { %66 = vst [vmem:[#allocation1] sm:$0xff] %v65_v10  ;;  %v107_v17 = vrot.slane %v106_v16, 1  ;;  %v120_v18 = vld [vmem:[#allocation0 + $0x47] ss:$-1 sm:$0xff]  ;;  %v134_v19 = vld [vmem:[#allocation0 + $0x57] ss:$-1 sm:$0xff] }
   0x7   :  { %80 = vst [vmem:[#allocation1 + $0x8] sm:$0xff] %v79_v14  ;;  %94 = vst [vmem:[#allocation1 + $0x10] sm:$0xff] %v93_v15  ;;  %v121_v20 = vrot.slane %v120_v18, 1  ;;  %v135_v21 = vrot.slane %v134_v19, 1  ;;  %v148_v22 = vld [vmem:[#allocation0 + $0x67] ss:$-1 sm:$0xff] }
   0x8   :  { %v162_v23 = vld [vmem:[#allocation0 + $0x77] ss:$-1 sm:$0xff]  ;;  %108 = vst [vmem:[#allocation1 + $0x18] sm:$0xff] %v107_v17  ;;  %v149_v24 = vrot.slane %v148_v22, 1 }
   0x9   :  { %v163_v25 = vrot.slane %v162_v23, 1  ;;  %v69_v26 = vld [vmem:[#allocation0 + $0xf] ss:$-1 sm:$0xff]  ;;  %v83_v27 = vld [vmem:[#allocation0 + $0x1f] ss:$-1 sm:$0xff]  ;;  %122 = vst [vmem:[#allocation1 + $0x20] sm:$0xff] %v121_v20 }
   0xa   :  { %v97_v28 = vld [vmem:[#allocation0 + $0x2f] ss:$-1 sm:$0xff]  ;;  %136 = vst [vmem:[#allocation1 + $0x28] sm:$0xff] %v135_v21  ;;  %v70_v29 = vrot.slane %v69_v26, 1  ;;  %v84_v30 = vrot.slane %v83_v27, 1  ;;  %150 = vst [vmem:[#allocation1 + $0x30] sm:$0xff] %v149_v24 }
   0xb   :  { %v98_v31 = vrot.slane %v97_v28, 1  ;;  %v111_v32 = vld [vmem:[#allocation0 + $0x3f] ss:$-1 sm:$0xff]  ;;  %164 = vst [vmem:[#allocation1 + $0x38] sm:$0xff] %v163_v25  ;;  %v125_v34 = vld [vmem:[#allocation0 + $0x4f] ss:$-1 sm:$0xff] }
   0xc   :  { %v112_v33 = vrot.slane %v111_v32, 1  ;;  %v139_v35 = vld [vmem:[#allocation0 + $0x5f] ss:$-1 sm:$0xff]  ;;  %74 = vst.msk [vmem:[#allocation1] sm:$0xff] %vm73_vm0, %v70_v29  ;;  %88 = vst.msk [vmem:[#allocation1 + $0x8] sm:$0xff] %vm73_vm0, %v84_v30  ;;  %v126_v36 = vrot.slane %v125_v34, 1 }
   0xd   :  { %102 = vst.msk [vmem:[#allocation1 + $0x10] sm:$0xff] %vm73_vm0, %v98_v31  ;;  %v140_v37 = vrot.slane %v139_v35, 1  ;;  %v153_v38 = vld [vmem:[#allocation0 + $0x6f] ss:$-1 sm:$0xff]  ;;  %v167_v39 = vld [vmem:[#allocation0 + $0x7f] ss:$-1 sm:$0xff] }
   0xe   :  { %116 = vst.msk [vmem:[#allocation1 + $0x18] sm:$0xff] %vm73_vm0, %v112_v33  ;;  %v154_v40 = vrot.slane %v153_v38, 1  ;;  %v168_v41 = vrot.slane %v167_v39, 1  ;;  %130 = vst.msk [vmem:[#allocation1 + $0x20] sm:$0xff] %vm73_vm0, %v126_v36 }
   0xf   :  { %144 = vst.msk [vmem:[#allocation1 + $0x28] sm:$0xff] %vm73_vm0, %v140_v37 }
  0x10   :  { %158 = vst.msk [vmem:[#allocation1 + $0x30] sm:$0xff] %vm73_vm0, %v154_v40  ;;  %172 = vst.msk [vmem:[#allocation1 + $0x38] sm:$0xff] %vm73_vm0, %v168_v41 }
  0x13   :  { %v214_v42 = vld [vmem:[#allocation1] sm:$0xff]  ;;  %v216_v43 = vld [vmem:[#allocation1 + $0x8] sm:$0xff] }
  0x14   :  { %v218_v44 = vld [vmem:[#allocation1 + $0x10] sm:$0xff]  ;;  %215 = vst [vmem:[%s330_s1] sm:$0xff] %v214_v42  ;;  %217 = vst [vmem:[%s330_s1 + $0x8] sm:$0xff] %v216_v43 }
  0x15   :  { %219 = vst [vmem:[%s330_s1 + $0x10] sm:$0xff] %v218_v44  ;;  %v220_v45 = vld [vmem:[#allocation1 + $0x18] sm:$0xff]  ;;  %v222_v46 = vld [vmem:[#allocation1 + $0x20] sm:$0xff] }
  0x16   :  { %221 = vst [vmem:[%s330_s1 + $0x18] sm:$0xff] %v220_v45  ;;  %v224_v47 = vld [vmem:[#allocation1 + $0x28] sm:$0xff]  ;;  %223 = vst [vmem:[%s330_s1 + $0x20] sm:$0xff] %v222_v46 }
  0x17   :  { %225 = vst [vmem:[%s330_s1 + $0x28] sm:$0xff] %v224_v47  ;;  %v226_v48 = vld [vmem:[#allocation1 + $0x30] sm:$0xff]  ;;  %v228_v49 = vld [vmem:[#allocation1 + $0x38] sm:$0xff] }
  0x18   :  { %227 = vst [vmem:[%s330_s1 + $0x30] sm:$0xff] %v226_v48  ;;  %229 = vst [vmem:[%s330_s1 + $0x38] sm:$0xff] %v228_v49 }

// kernel: shu_forward.1
= control target key start
LH: loop header
LB: loop body
LE: loop exit
PB: predicated region body
PF: predicated region fallthrough
CT: control target
= control target key end

     0   :  { %vm27_vm0 = vcmask 64512   ;;  %v1962_v2 = vmov 0.0   ;;  %v1963_v4 = vmov 0   ;;  %vm967_vm1 = vcmask 130048   ;;  %s2077_s0 = inlined_call_operand.vmem [shape: f32[2,8,144], index: 0, kind: input, shape index: {}]   ;;  %s2078_s1 = inlined_call_operand.vmem [shape: f32[8,8], index: 1, kind: input, shape index: {}]   ;;  %s2079_s2 = inlined_call_operand.vmem [shape: f32[8,1], index: 2, kind: input, shape index: {}]   ;;  %s2080_s3 = inlined_call_operand.vmem [shape: f32[8,8], index: 3, kind: input, shape index: {}]   ;;  %s2081_s4 = inlined_call_operand.vmem [shape: f32[2,8,144], index: 4, kind: output, shape index: {}]  }
   0x1   :  { %v21_v0 = vld [vmem:[%s2077_s0 + $0x8] sm:$0xff]  ;;  %v20_v1 = vld [vmem:[%s2077_s0] sm:$0xff]  ;;  %97 = vmatprep.mubr.f32.mxu0 %v1962_v2  ;;  %1961 = vset.pattern.permute.xlu0 %v1963_v4  ;;  %v1912_v22 = vld [vmem:[%s2077_s0 + $0x18] sm:$0xff] }
   0x2   :  { %v17_v3 = vld [vmem:[%s2078_s1] sm:$0xff]  ;;  %v31_v5 = vand.u32 4294901760, %v21_v0  ;;  %v33_v6 = vand.u32 4294901760, %v20_v1  ;;  %567 = vmatprep.mubr.f32.mxu1 %v1962_v2  ;;  %v972_v23 = vand.u32 4294901760, %v1912_v22  ;;  %v1911_v24 = vld [vmem:[%s2077_s0 + $0x10] sm:$0xff] }
   0x3   :  { %v29_v7 = vsel %vm27_vm0, %v17_v3, 0  ;;  %v18_v8 = vld [vmem:[%s2079_s2] sm:$0xff]  ;;  %v974_v25 = vand.u32 4294901760, %v1911_v24 }
   0x4   :  { %v2004_v9 = vand.u32 4294901760, %v29_v7  ;;  %24 = vperm.xlu0 %1961, %v18_v8   ;;  %32 = vmatprep.subr.mxu0 %v31_v5  ;;  %v116_v10 = vsub.f32 %v20_v1, %v33_v6  ;;  %v110_v11 = vsub.f32 %v21_v0, %v31_v5  ;;  %v1051_v26 = vsub.f32 %v1912_v22, %v972_v23  ;;  %v19_v34 = vld [vmem:[%s2080_s3] sm:$0xff] }
   0x5   :  { %34 = vmatpush1.msra.mxu0 %v33_v6  ;;  %v1057_v27 = vsub.f32 %v1911_v24, %v974_v25  ;;  %v499_v35 = vsel %vm27_vm0, %v19_v34, 0 }
   0x6   :  { %v99_v12 = vsub.f32 %v29_v7, %v2004_v9  ;;  %v111_v13 = vand.u32 4294901760, %v110_v11  ;;  %v117_v14 = vand.u32 4294901760, %v116_v10  ;;  %v1052_v28 = vand.u32 4294901760, %v1051_v26 }
   0x7   :  { %v1058_v29 = vand.u32 4294901760, %v1057_v27  ;;  %v2034_v36 = vand.u32 4294901760, %v499_v35 }
   0x8   :  { %v100_v15 = vand.u32 4294901760, %v99_v12  ;;  %v112_v16 = vsub.f32 %v110_v11, %v111_v13  ;;  %v118_v17 = vsub.f32 %v116_v10, %v117_v14  ;;  %v1053_v30 = vsub.f32 %v1051_v26, %v1052_v28 }
   0x9   :  { %v1059_v31 = vsub.f32 %v1057_v27, %v1058_v29  ;;  %v2037_v37 = vsub.f32 %v499_v35, %v2034_v36 }
   0xa   :  { %v101_v18 = vsub.f32 %v99_v12, %v100_v15  ;;  %v113_v19 = vand.u32 4294901760, %v112_v16  ;;  %v119_v20 = vand.u32 4294901760, %v118_v17  ;;  %v1054_v32 = vand.u32 4294901760, %v1053_v30 }
   0xb   :  { %v1060_v33 = vand.u32 4294901760, %v1059_v31  ;;  %v2040_v39 = vand.u32 4294901760, %v2037_v37 }
   0xc   :  { %v102_v21 = vand.u32 4294901760, %v101_v18  ;;  %114 = vmatprep.subr.mxu0 %v113_v19 }
   0xd   :  { %v571_v44 = vsub.f32 %v2037_v37, %v2040_v39 }
   0xe   :  { %103 = vmatmul.mubr.f32.vlgmr.msra.gmra.mrb[0].mxu0 %v102_v21 }
   0xf   :  { %120 = vmatpush1.msra.mxu0 %v119_v20  ;;  %183 = vmatprep.mubr.f32.mxu0 %v1962_v2  ;;  %v572_v49 = vand.u32 4294901760, %v571_v44 }
  0x10   :  { %193 = vmatprep.subr.mxu0 %v110_v11 }
  0x16   :  { %185 = vmatmul.mubr.f32.vlgmr.msra.gmra.mrb[0].mxu0 %v2004_v9 }
  0x17   :  { %196 = vmatpush1.msra.mxu0 %v116_v10  ;;  %259 = vmatprep.mubr.f32.mxu0 %v1962_v2 }
  0x18   :  { %269 = vmatprep.subr.mxu0 %v31_v5 }
  0x1e   :  { %262 = vmatmul.mubr.f32.vlgmr.msra.gmra.mrb[0].mxu0 %v99_v12 }
  0x1f   :  { %271 = vmatpush1.msra.mxu0 %v33_v6  ;;  %334 = vmatprep.mubr.f32.mxu0 %v1962_v2 }
  0x20   :  { %347 = vmatprep.subr.mxu0 %v111_v13 }
  0x26   :  { %338 = vmatmul.mubr.f32.vlgmr.msra.gmra.mrb[0].mxu0 %v100_v15 }
  0x27   :  { %351 = vmatpush1.msra.mxu0 %v117_v14  ;;  %414 = vmatprep.mubr.f32.mxu0 %v1962_v2 }
  0x28   :  { %423 = vmatprep.subr.mxu0 %v31_v5 }
  0x2e   :  { %416 = vmatmul.mubr.f32.vlgmr.msra.gmra.mrb[0].mxu0 %v2004_v9 }
  0x2f   :  { %425 = vmatpush1.msra.mxu0 %v33_v6  ;;  %488 = vmatprep.mubr.f32.mxu0 %v1962_v2 }
  0x30   :  { %973 = vmatprep.subr.mxu0 %v972_v23 }
  0x36   :  { %490 = vmatmul.mubr.f32.vlgmr.msra.gmra.mrb[0].mxu0 %v2004_v9 }
  0x37   :  { %975 = vmatpush1.msra.mxu0 %v974_v25  ;;  %1038 = vmatprep.mubr.f32.mxu0 %v1962_v2 }
  0x38   :  { %1055 = vmatprep.subr.mxu0 %v1054_v32 }
  0x3a   :  { %1044 = vmatmul.mubr.f32.vlgmr.msra.gmra.mrb[2].mxu0 %v102_v21 }
  0x3b   :  { %1061 = vmatpush1.msra.mxu0 %v1060_v33  ;;  %1124 = vmatprep.mubr.f32.mxu0 %v1962_v2 }
  0x3c   :  { %1134 = vmatprep.subr.mxu0 %v1051_v26 }
  0x42   :  { %1126 = vmatmul.mubr.f32.vlgmr.msra.gmra.mrb[2].mxu0 %v2004_v9 }
  0x43   :  { %1137 = vmatpush1.msra.mxu0 %v1057_v27  ;;  %1200 = vmatprep.mubr.f32.mxu0 %v1962_v2 }
  0x44   :  { %1210 = vmatprep.subr.mxu0 %v972_v23 }
  0x4a   :  { %1203 = vmatmul.mubr.f32.vlgmr.msra.gmra.mrb[2].mxu0 %v99_v12 }
  0x4b   :  { %1212 = vmatpush1.msra.mxu0 %v974_v25  ;;  %1275 = vmatprep.mubr.f32.mxu0 %v1962_v2 }
  0x4c   :  { %1288 = vmatprep.subr.mxu0 %v1052_v28 }
  0x52   :  { %1279 = vmatmul.mubr.f32.vlgmr.msra.gmra.mrb[2].mxu0 %v100_v15 }
  0x53   :  { %1292 = vmatpush1.msra.mxu0 %v1058_v29  ;;  %1355 = vmatprep.mubr.f32.mxu0 %v1962_v2 }
  0x54   :  { %1364 = vmatprep.subr.mxu0 %v972_v23 }
  0x5a   :  { %1357 = vmatmul.mubr.f32.vlgmr.msra.gmra.mrb[2].mxu0 %v2004_v9 }
  0x5b   :  { %1366 = vmatpush1.msra.mxu0 %v974_v25  ;;  %1429 = vmatprep.mubr.f32.mxu0 %v1962_v2 }
  0x62   :  { %1431 = vmatmul.mubr.f32.vlgmr.msra.gmra.mrb[2].mxu0 %v2004_v9 }
  0x83   :  { %v25_v38 = vpop.permute.xlu0 %24 }
 0x109   :  { %v491_v40 = vpop.f32.mrb[0].mxu0 }
 0x10a   :  { %v1915_v41 = vadd.f32 %v491_v40, %v25_v38  ;;  %v493_v42 = vpop.f32.mrb[1].mxu0 }
 0x10b   :  { %v1916_v43 = vadd.f32 %v493_v42, %v25_v38 }
 0x10c   :  { %v496_v45 = vmax.f32 %v1915_v41, 0.0 }
 0x10d   :  { %v497_v46 = vmax.f32 %v1916_v43, 0.0 }
 0x10e   :  { %v503_v47 = vand.u32 4294901760, %v496_v45 }
 0x10f   :  { %v501_v48 = vand.u32 4294901760, %v497_v46 }
 0x110   :  { %v586_v50 = vsub.f32 %v496_v45, %v503_v47 }
 0x111   :  { %v580_v51 = vsub.f32 %v497_v46, %v501_v48  ;;  %502 = vmatprep.subr.mxu1 %v501_v48 }
 0x112   :  { %v587_v52 = vand.u32 4294901760, %v586_v50  ;;  %504 = vmatpush1.msra.mxu1 %v503_v47 }
 0x113   :  { %573 = vmatmul.mubr.f32.vlgmr.msra.gmra.mrb[0].mxu1 %v572_v49  ;;  %v581_v53 = vand.u32 4294901760, %v580_v51 }
 0x114   :  { %v588_v54 = vsub.f32 %v586_v50, %v587_v52  ;;  %653 = vmatprep.mubr.f32.mxu1 %v1962_v2 }
 0x115   :  { %v582_v55 = vsub.f32 %v580_v51, %v581_v53 }
 0x116   :  { %v589_v57 = vand.u32 4294901760, %v588_v54 }
 0x117   :  { %v583_v56 = vand.u32 4294901760, %v582_v55 }
 0x119   :  { %584 = vmatprep.subr.mxu1 %v583_v56 }
 0x11a   :  { %590 = vmatpush1.msra.mxu1 %v589_v57 }
 0x11b   :  { %655 = vmatmul.mubr.f32.vlgmr.msra.gmra.mrb[0].mxu1 %v2034_v36  ;;  %663 = vmatprep.subr.mxu1 %v580_v51 }
 0x11c   :  { %666 = vmatpush1.msra.mxu1 %v586_v50  ;;  %729 = vmatprep.mubr.f32.mxu1 %v1962_v2 }
 0x11d   :  { %739 = vmatprep.subr.mxu1 %v501_v48 }
 0x123   :  { %732 = vmatmul.mubr.f32.vlgmr.msra.gmra.mrb[0].mxu1 %v2037_v37 }
 0x124   :  { %741 = vmatpush1.msra.mxu1 %v503_v47  ;;  %804 = vmatprep.mubr.f32.mxu1 %v1962_v2 }
 0x125   :  { %817 = vmatprep.subr.mxu1 %v581_v53 }
 0x12b   :  { %808 = vmatmul.mubr.f32.vlgmr.msra.gmra.mrb[0].mxu1 %v2040_v39 }
 0x12c   :  { %821 = vmatpush1.msra.mxu1 %v587_v52  ;;  %884 = vmatprep.mubr.f32.mxu1 %v1962_v2 }
 0x12d   :  { %893 = vmatprep.subr.mxu1 %v501_v48 }
 0x133   :  { %886 = vmatmul.mubr.f32.vlgmr.msra.gmra.mrb[0].mxu1 %v2034_v36 }
 0x134   :  { %895 = vmatpush1.msra.mxu1 %v503_v47  ;;  %958 = vmatprep.mubr.f32.mxu1 %v1962_v2 }
 0x135   :  { %v1432_v58 = vpop.f32.mrb[2].mxu0 }
 0x136   :  { %v1917_v59 = vadd.f32 %v1432_v58, %v25_v38  ;;  %v1434_v60 = vpop.f32.mrb[3].mxu0 }
 0x137   :  { %v1918_v61 = vadd.f32 %v1434_v60, %v25_v38 }
 0x138   :  { %v1437_v62 = vmax.f32 %v1917_v59, 0.0 }
 0x139   :  { %v1438_v63 = vmax.f32 %v1918_v61, 0.0 }
 0x13a   :  { %v1441_v0 = vand.u32 4294901760, %v1437_v62 }
 0x13b   :  { %v1439_v1 = vand.u32 4294901760, %v1438_v63  ;;  %960 = vmatmul.mubr.f32.vlgmr.msra.gmra.mrb[0].mxu1 %v2034_v36 }
 0x13c   :  { %v1524_v3 = vsub.f32 %v1437_v62, %v1441_v0  ;;  %1505 = vmatprep.mubr.f32.mxu1 %v1962_v2 }
 0x13d   :  { %v1518_v4 = vsub.f32 %v1438_v63, %v1439_v1  ;;  %1440 = vmatprep.subr.mxu1 %v1439_v1 }
 0x13e   :  { %v1525_v5 = vand.u32 4294901760, %v1524_v3  ;;  %1442 = vmatpush1.msra.mxu1 %v1441_v0 }
 0x13f   :  { %1511 = vmatmul.mubr.f32.vlgmr.msra.gmra.mrb[2].mxu1 %v572_v49  ;;  %v1519_v6 = vand.u32 4294901760, %v1518_v4 }
 0x140   :  { %v1526_v7 = vsub.f32 %v1524_v3, %v1525_v5  ;;  %1591 = vmatprep.mubr.f32.mxu1 %v1962_v2 }
 0x141   :  { %v1520_v8 = vsub.f32 %v1518_v4, %v1519_v6 }
 0x142   :  { %v1527_v10 = vand.u32 4294901760, %v1526_v7 }
 0x143   :  { %v1521_v9 = vand.u32 4294901760, %v1520_v8 }
 0x145   :  { %1522 = vmatprep.subr.mxu1 %v1521_v9 }
 0x146   :  { %1528 = vmatpush1.msra.mxu1 %v1527_v10 }
 0x147   :  { %1593 = vmatmul.mubr.f32.vlgmr.msra.gmra.mrb[2].mxu1 %v2034_v36  ;;  %1601 = vmatprep.subr.mxu1 %v1518_v4 }
 0x148   :  { %1604 = vmatpush1.msra.mxu1 %v1524_v3  ;;  %1667 = vmatprep.mubr.f32.mxu1 %v1962_v2 }
 0x149   :  { %1677 = vmatprep.subr.mxu1 %v1439_v1 }
 0x14f   :  { %1670 = vmatmul.mubr.f32.vlgmr.msra.gmra.mrb[2].mxu1 %v2037_v37 }
 0x150   :  { %1679 = vmatpush1.msra.mxu1 %v1441_v0  ;;  %1742 = vmatprep.mubr.f32.mxu1 %v1962_v2 }
 0x151   :  { %1755 = vmatprep.subr.mxu1 %v1519_v6 }
 0x157   :  { %1746 = vmatmul.mubr.f32.vlgmr.msra.gmra.mrb[2].mxu1 %v2040_v39 }
 0x158   :  { %1759 = vmatpush1.msra.mxu1 %v1525_v5  ;;  %1822 = vmatprep.mubr.f32.mxu1 %v1962_v2 }
 0x159   :  { %1831 = vmatprep.subr.mxu1 %v1439_v1 }
 0x15f   :  { %1824 = vmatmul.mubr.f32.vlgmr.msra.gmra.mrb[2].mxu1 %v2034_v36 }
 0x160   :  { %1833 = vmatpush1.msra.mxu1 %v1441_v0  ;;  %1896 = vmatprep.mubr.f32.mxu1 %v1962_v2 }
 0x167   :  { %1898 = vmatmul.mubr.f32.vlgmr.msra.gmra.mrb[2].mxu1 %v2034_v36 }
 0x20e   :  { %v961_v11 = vpop.f32.mrb[0].mxu1 }
 0x20f   :  { %966 = vst [vmem:[%s2081_s4] sm:$0xff] %v961_v11  ;;  %v963_v12 = vpop.f32.mrb[1].mxu1 }
 0x210   :  { %968 = vst.msk [vmem:[%s2081_s4 + $0x8] sm:$0xff] %vm967_vm1, %v963_v12 }
 0x23a   :  { %v1899_v13 = vpop.f32.mrb[2].mxu1 }
 0x23b   :  { %1913 = vst [vmem:[%s2081_s4 + $0x10] sm:$0xff] %v1899_v13  ;;  %v1901_v14 = vpop.f32.mrb[3].mxu1 }
 0x23c   :  { %1914 = vst.msk [vmem:[%s2081_s4 + $0x18] sm:$0xff] %vm967_vm1, %v1901_v14 }

</bundles_post_ra>
